<compile_context>
chip_gen: v5e
topology: v5e:2x2
jax: 0.10.0
libtpu: 0.0.40
codegen_flags: <defaults>
</compile_context>

<pallas_src>
import jax
import jax.numpy as jnp
from jax.experimental import pallas as pl
from jax.experimental.pallas import tpu as pltpu

N_IN = 9      # board features
N_HID = 128   # hidden width
N_OUT = 9     # actions


def _round_up(n, m):
    return ((n + m - 1) // m) * m


def dqn_kernel(x_ref, w1_ref, b1_ref, w2_ref, b2_ref, w3_ref, b3_ref, out_ref):
    """One batch tile: out = relu(relu(x@W1+b1)@W2+b2)@W3+b3 (f32 accumulate)."""
    cdt = w1_ref.dtype  # compute dtype for MXU inputs (f32 or bf16)

    # fc1 + relu (bias add / ReLU kept in f32)
    x = x_ref[...].astype(cdt)
    h1 = jnp.dot(x, w1_ref[...], preferred_element_type=jnp.float32)
    h1 = jnp.maximum(h1 + b1_ref[...], 0.0)

    # fc2 + relu
    h2 = jnp.dot(h1.astype(cdt), w2_ref[...], preferred_element_type=jnp.float32)
    h2 = jnp.maximum(h2 + b2_ref[...], 0.0)

    # fc3 (no activation); direct 9-wide store (no lane padding, no wrapper slice)
    out_ref[...] = (
        jnp.dot(h2.astype(cdt), w3_ref[...], preferred_element_type=jnp.float32)
        + b3_ref[...]
    )


def prepare_params(params, *, use_bf16=True):
    """One-time weight prep: cast matmul weights to the MXU compute dtype.

    Biases stay f32 (bias add / ReLU epilogue runs in f32 on the VPU).
    Do this once at init — not per forward call.
    """
    w1, b1, w2, b2, w3, b3 = params
    cdt = jnp.bfloat16 if use_bf16 else jnp.float32
    return (
        w1.astype(cdt), b1.astype(jnp.float32),
        w2.astype(cdt), b2.astype(jnp.float32),
        w3.astype(cdt), b3.astype(jnp.float32),
    )


def dqn_forward(x, params, *, tile_b=512, core_parallel=False):
    """x: (B, 9) float32 -> (B, 9) float32. `params` from prepare_params()."""
    w1, b1, w2, b2, w3, b3 = params
    B = x.shape[0]

    if B <= tile_b:
        # Single block covering the whole batch (full-dim block is always legal).
        TILE_B = B
    else:
        # 128-aligned tile: matches v5e 4x128^2 and (at 512) v6e/v7x 2x256^2 MXU.
        TILE_B = _round_up(min(tile_b, B), 128)

    grid = (pl.cdiv(B, TILE_B),)

    # Weights/biases: constant block index -> resident in VMEM across the grid.
    resident = lambda shape: pl.BlockSpec(shape, lambda i: (0, 0))
    in_specs = [
        pl.BlockSpec((TILE_B, N_IN), lambda i: (i, 0)),   # x tile (contiguous rows)
        resident((N_IN, N_HID)),                          # w1
        resident((1, N_HID)),                             # b1
        resident((N_HID, N_HID)),                         # w2
        resident((1, N_HID)),                             # b2
        resident((N_HID, N_OUT)),                         # w3
        resident((1, N_OUT)),                             # b3
    ]
    out_spec = pl.BlockSpec((TILE_B, N_OUT), lambda i: (i, 0))

    w_bytes = w1.dtype.itemsize
    flops = 2 * B * (N_IN * N_HID + N_HID * N_HID + N_HID * N_OUT)
    bytes_accessed = (
        B * N_IN * 4                                      # x in (f32)
        + B * N_OUT * 4                                   # out (f32)
        + (N_IN * N_HID + N_HID * N_HID + N_HID * N_OUT) * w_bytes
        + (2 * N_HID + N_OUT) * 4                         # biases (f32)
    )
    cost = pl.CostEstimate(
        flops=flops, transcendentals=0, bytes_accessed=bytes_accessed
    )

    # "parallel" is safe everywhere; pltpu.CORE_PARALLEL actually shards the
    # batch axis across the two TensorCores on v7x (opt-in).
    sem = (pltpu.CORE_PARALLEL,) if core_parallel else ("parallel",)

    return pl.pallas_call(
        dqn_kernel,
        out_shape=jax.ShapeDtypeStruct((B, N_OUT), jnp.float32),
        grid=grid,
        in_specs=in_specs,
        out_specs=out_spec,
        compiler_params=pltpu.CompilerParams(dimension_semantics=sem),
        cost_estimate=cost,
    )(x, w1, b1, w2, b2, w3, b3)


def init_params(key):
    """Deterministic init mimicking PyTorch nn.Linear default (U[-1/sqrt(fan_in), +])."""
    ks = jax.random.split(key, 6)

    def linear(kw, kb, fan_in, fan_out):
        bound = 1.0 / jnp.sqrt(jnp.float32(fan_in))
        # stored as (in, out) so kernel does x @ W
        w = jax.random.uniform(kw, (fan_in, fan_out), jnp.float32, -bound, bound)
        b = jax.random.uniform(kb, (1, fan_out), jnp.float32, -bound, bound)
        return w, b

    w1, b1 = linear(ks[0], ks[1], N_IN, N_HID)
    w2, b2 = linear(ks[2], ks[3], N_HID, N_HID)
    w3, b3 = linear(ks[4], ks[5], N_HID, N_OUT)
    return (w1, b1, w2, b2, w3, b3)


def _reference(x, params):
    w1, b1, w2, b2, w3, b3 = params
    h = jnp.maximum(x @ w1 + b1, 0.0)
    h = jnp.maximum(h @ w2 + b2, 0.0)
    return h @ w3 + b3


if __name__ == "__main__":
    key = jax.random.PRNGKey(0)
    k_params, k_x1, k_x2 = jax.random.split(key, 3)
    raw_params = init_params(k_params)

    # f32 MXU path — tight tolerance.
    params_f32 = prepare_params(raw_params, use_bf16=False)

    # Small batch of board states (length-9 vectors, e.g. tic-tac-toe).
    x_small = jax.random.normal(k_x1, (8, N_IN), jnp.float32)
    out_small = jax.block_until_ready(dqn_forward(x_small, params_f32))
    ref_small = _reference(x_small, raw_params)
    assert out_small.shape == (8, N_OUT)
    assert jnp.allclose(out_small, ref_small, atol=1e-5, rtol=1e-5)

    # Non-tile-multiple batch with a small tile to exercise the multi-step grid
    # and the masked partial last block (300 rows, tile 128 -> 3 grid steps).
    x_big = jax.random.normal(k_x2, (300, N_IN), jnp.float32)
    out_big = jax.block_until_ready(dqn_forward(x_big, params_f32, tile_b=128))
    ref_big = _reference(x_big, raw_params)
    assert out_big.shape == (300, N_OUT)
    assert jnp.allclose(out_big, ref_big, atol=1e-5, rtol=1e-5)

    # Default bf16 MXU fast path (f32 accumulation / epilogue) — looser tolerance.
    params_bf16 = prepare_params(raw_params)  # use_bf16=True by default
    out_bf16 = jax.block_until_ready(dqn_forward(x_big, params_bf16, tile_b=128))
    assert jnp.allclose(out_bf16, ref_big, atol=5e-2, rtol=5e-2)

    print("KERNEL_OK")
</pallas_src>

<mosaic_0001>
module attributes {stable_mosaic.version = 11 : i64} {
  func.func @dqn_kernel(%arg0: i32, %arg1: memref<8x9xf32, #tpu.memory_space<vmem>>, %arg2: memref<9x128xf32, #tpu.memory_space<vmem>>, %arg3: memref<1x128xf32, #tpu.memory_space<vmem>>, %arg4: memref<128x128xf32, #tpu.memory_space<vmem>>, %arg5: memref<1x128xf32, #tpu.memory_space<vmem>>, %arg6: memref<128x9xf32, #tpu.memory_space<vmem>>, %arg7: memref<1x9xf32, #tpu.memory_space<vmem>>, %arg8: memref<8x9xf32, #tpu.memory_space<vmem>>) attributes {dimension_semantics = [#tpu.dimension_semantics<parallel>], iteration_bounds = array<i64: 1>, scalar_prefetch = 0 : i64, scratch_operands = 0 : i64, tpu.core_type = #tpu.core_type<tc>, window_params = [{transform_indices = @transform_0, window_bounds = array<i64: 8, 9>}, {pipeline_mode = #tpu.pipeline_mode<synchronous>, transform_indices = @transform_1, window_bounds = array<i64: 9, 128>}, {pipeline_mode = #tpu.pipeline_mode<synchronous>, transform_indices = @transform_2, window_bounds = array<i64: 1, 128>}, {pipeline_mode = #tpu.pipeline_mode<synchronous>, transform_indices = @transform_3, window_bounds = array<i64: 128, 128>}, {pipeline_mode = #tpu.pipeline_mode<synchronous>, transform_indices = @transform_4, window_bounds = array<i64: 1, 128>}, {pipeline_mode = #tpu.pipeline_mode<synchronous>, transform_indices = @transform_5, window_bounds = array<i64: 128, 9>}, {pipeline_mode = #tpu.pipeline_mode<synchronous>, transform_indices = @transform_6, window_bounds = array<i64: 1, 9>}, {transform_indices = @transform_7, window_bounds = array<i64: 8, 9>}]} {
    %c0 = arith.constant 0 : index
    %c0_0 = arith.constant 0 : index
    %0 = vector.load %arg1[%c0, %c0_0] : memref<8x9xf32, #tpu.memory_space<vmem>>, vector<8x9xf32>
    %c0_1 = arith.constant 0 : index
    %c0_2 = arith.constant 0 : index
    %1 = vector.load %arg2[%c0_1, %c0_2] : memref<9x128xf32, #tpu.memory_space<vmem>>, vector<9x128xf32>
    %cst = arith.constant dense<0.000000e+00> : vector<8x128xf32>
    %2 = tpu.matmul %0, %1, %cst {dimension_numbers = #tpu.dot_dimension_numbers<[1], [0], [0], [1], [0, 0, 1, 1], [], []>} : vector<8x9xf32>, vector<9x128xf32>, vector<8x128xf32> -> vector<8x128xf32>
    %c0_3 = arith.constant 0 : index
    %c0_4 = arith.constant 0 : index
    %3 = vector.load %arg3[%c0_3, %c0_4] : memref<1x128xf32, #tpu.memory_space<vmem>>, vector<1x128xf32>
    %4 = vector.broadcast %3 : vector<1x128xf32> to vector<8x128xf32>
    %5 = arith.addf %2, %4 : vector<8x128xf32>
    %cst_5 = arith.constant 0.000000e+00 : f32
    %6 = vector.broadcast %cst_5 : f32 to vector<8x128xf32>
    %7 = arith.maximumf %5, %6 : vector<8x128xf32>
    %c0_6 = arith.constant 0 : index
    %c0_7 = arith.constant 0 : index
    %8 = vector.load %arg4[%c0_6, %c0_7] : memref<128x128xf32, #tpu.memory_space<vmem>>, vector<128x128xf32>
    %cst_8 = arith.constant dense<0.000000e+00> : vector<8x128xf32>
    %9 = tpu.matmul %7, %8, %cst_8 {dimension_numbers = #tpu.dot_dimension_numbers<[1], [0], [0], [1], [0, 0, 1, 1], [], []>} : vector<8x128xf32>, vector<128x128xf32>, vector<8x128xf32> -> vector<8x128xf32>
    %c0_9 = arith.constant 0 : index
    %c0_10 = arith.constant 0 : index
    %10 = vector.load %arg5[%c0_9, %c0_10] : memref<1x128xf32, #tpu.memory_space<vmem>>, vector<1x128xf32>
    %11 = vector.broadcast %10 : vector<1x128xf32> to vector<8x128xf32>
    %12 = arith.addf %9, %11 : vector<8x128xf32>
    %cst_11 = arith.constant 0.000000e+00 : f32
    %13 = vector.broadcast %cst_11 : f32 to vector<8x128xf32>
    %14 = arith.maximumf %12, %13 : vector<8x128xf32>
    %c0_12 = arith.constant 0 : index
    %c0_13 = arith.constant 0 : index
    %15 = vector.load %arg6[%c0_12, %c0_13] : memref<128x9xf32, #tpu.memory_space<vmem>>, vector<128x9xf32>
    %cst_14 = arith.constant dense<0.000000e+00> : vector<8x9xf32>
    %16 = tpu.matmul %14, %15, %cst_14 {dimension_numbers = #tpu.dot_dimension_numbers<[1], [0], [0], [1], [0, 0, 1, 1], [], []>} : vector<8x128xf32>, vector<128x9xf32>, vector<8x9xf32> -> vector<8x9xf32>
    %c0_15 = arith.constant 0 : index
    %c0_16 = arith.constant 0 : index
    %17 = vector.load %arg7[%c0_15, %c0_16] : memref<1x9xf32, #tpu.memory_space<vmem>>, vector<1x9xf32>
    %18 = vector.broadcast %17 : vector<1x9xf32> to vector<8x9xf32>
    %19 = arith.addf %16, %18 : vector<8x9xf32>
    %c0_17 = arith.constant 0 : index
    %c0_18 = arith.constant 0 : index
    %20 = vector.load %arg8[%c0_17, %c0_18] : memref<8x9xf32, #tpu.memory_space<vmem>>, vector<8x9xf32>
    tpu.vector_store %arg8[%c0_17, %c0_18], %19 {strides = array<i32>} : memref<8x9xf32, #tpu.memory_space<vmem>>, vector<8x9xf32>,
    return
  }
  func.func @transform_0(%arg0: i32) -> (i32, i32) {
    %c0_i32 = arith.constant 0 : i32
    %c0_i32_0 = arith.constant 0 : i32
    return %arg0, %c0_i32 : i32, i32
  }
  func.func @transform_1(%arg0: i32) -> (i32, i32) {
    %c0_i32 = arith.constant 0 : i32
    %c0_i32_0 = arith.constant 0 : i32
    %c0_i32_1 = arith.constant 0 : i32
    return %c0_i32, %c0_i32_0 : i32, i32
  }
  func.func @transform_2(%arg0: i32) -> (i32, i32) {
    %c0_i32 = arith.constant 0 : i32
    %c0_i32_0 = arith.constant 0 : i32
    %c0_i32_1 = arith.constant 0 : i32
    return %c0_i32, %c0_i32_0 : i32, i32
  }
  func.func @transform_3(%arg0: i32) -> (i32, i32) {
    %c0_i32 = arith.constant 0 : i32
    %c0_i32_0 = arith.constant 0 : i32
    %c0_i32_1 = arith.constant 0 : i32
    return %c0_i32, %c0_i32_0 : i32, i32
  }
  func.func @transform_4(%arg0: i32) -> (i32, i32) {
    %c0_i32 = arith.constant 0 : i32
    %c0_i32_0 = arith.constant 0 : i32
    %c0_i32_1 = arith.constant 0 : i32
    return %c0_i32, %c0_i32_0 : i32, i32
  }
  func.func @transform_5(%arg0: i32) -> (i32, i32) {
    %c0_i32 = arith.constant 0 : i32
    %c0_i32_0 = arith.constant 0 : i32
    %c0_i32_1 = arith.constant 0 : i32
    return %c0_i32, %c0_i32_0 : i32, i32
  }
  func.func @transform_6(%arg0: i32) -> (i32, i32) {
    %c0_i32 = arith.constant 0 : i32
    %c0_i32_0 = arith.constant 0 : i32
    %c0_i32_1 = arith.constant 0 : i32
    return %c0_i32, %c0_i32_0 : i32, i32
  }
  func.func @transform_7(%arg0: i32) -> (i32, i32) {
    %c0_i32 = arith.constant 0 : i32
    %c0_i32_0 = arith.constant 0 : i32
    return %arg0, %c0_i32 : i32, i32
  }
}

</mosaic_0001>

<bundles_post_ra>
// kernel: tpu_custom_call.1
= control target key start
LH: loop header
LB: loop body
LE: loop exit
PB: predicated region body
PF: predicated region fallthrough
CT: control target
= control target key end

     0   :  { %12 = vsyncpa [#allocation3], 0  ;;  %s396_s0 = inlined_call_operand.hbm [shape: f32[8,9], index: 0, kind: input, shape index: {}]   ;;  %s397_s1 = inlined_call_operand.vmem [shape: f32[9,128], index: 1, kind: input, shape index: {}]   ;;  %s398_s2 = inlined_call_operand.vmem [shape: f32[1,128], index: 2, kind: input, shape index: {}]   ;;  %s399_s3 = inlined_call_operand.vmem [shape: f32[128,128], index: 3, kind: input, shape index: {}]   ;;  %s400_s4 = inlined_call_operand.vmem [shape: f32[1,128], index: 4, kind: input, shape index: {}]   ;;  %s401_s5 = inlined_call_operand.vmem [shape: f32[128,9], index: 5, kind: input, shape index: {}]   ;;  %s402_s6 = inlined_call_operand.vmem [shape: f32[1,9], index: 6, kind: input, shape index: {}]   ;;  %s403_s7 = inlined_call_operand.hbm [shape: f32[8,9], index: 7, kind: output, shape index: {}]  }
   0x1   :  { %13 = vsyncpa [#allocation4], 0  ;;  %s19_s26 = sshll.u32 %s396_s0, 4  ;;  %s235_s27 = smov [#allocation2]   ;;  %s20_s26 = int_to_ptr.hbm [resolvable:$true] %s19_s26 }
   0x2   :  { %s21_s28 = sshll.u32 %s235_s27, 4  ;;  %s22_s28 = int_to_ptr.vmem [resolvable:$true] %s21_s28 }
   0x3   :  { %24 = dma.hbm_to_vmem [thread:$0]  %s20_s26, 128, %s22_s28, [#allocation3]  }
   0x4   :  { %231 = dma.done.wait [#allocation3], 128  }
   0x5   :  { %232 = vsyncadd [#allocation3], 4294967168  ;;  %vm52_vm0 = vcmask 1040384   ;;  %v43_v0 = vld [vmem:[%s397_s1 + $0x8] sm:$0x1]  ;;  %v42_v1 = vld [vmem:[%s397_s1] sm:$0xff] }
   0x6   :  { %176 = vmatpush.msk.msra.mxu0 %vm52_vm0, %v43_v0  ;;  %v41_v2 = vld [vmem:[#allocation2] sm:$0xff]  ;;  %vm48_vm1 = vcmask 72704   ;;  %v92_v3 = vld [vmem:[%s399_s3 + $0x78] sm:$0xff]  ;;  %v91_v4 = vld [vmem:[%s399_s3 + $0x70] sm:$0xff]  ;;  %s236_s25 = smov [#allocation5]   ;;  %s166_s29 = sshll.u32 %s403_s7, 4  ;;  %s167_s29 = int_to_ptr.hbm [resolvable:$true] %s166_s29 }
   0x7   :  { %97 = vmatpush.msra.mxu1 %v92_v3  ;;  %v90_v5 = vld [vmem:[%s399_s3 + $0x68] sm:$0xff]  ;;  %v89_v6 = vld [vmem:[%s399_s3 + $0x60] sm:$0xff]  ;;  %v88_v7 = vld [vmem:[%s399_s3 + $0x58] sm:$0xff]  ;;  %s164_s26 = sshll.u32 %s236_s25, 4  ;;  %s165_s26 = int_to_ptr.vmem [resolvable:$true] %s164_s26 }
   0x8   :  { %71 = vmatpush.msra.mxu0 %v42_v1  ;;  %v87_v8 = vld [vmem:[%s399_s3 + $0x50] sm:$0xff]  ;;  %v86_v9 = vld [vmem:[%s399_s3 + $0x48] sm:$0xff]  ;;  %v85_v10 = vld [vmem:[%s399_s3 + $0x40] sm:$0xff] }
   0x9   :  { %177 = vmatmul.msk.f32.vlgmr.msra.gmra.mxu0 %vm48_vm1, %v41_v2  ;;  %98 = vmatpush.msra.mxu1 %v91_v4  ;;  %v84_v11 = vld [vmem:[%s399_s3 + $0x38] sm:$0xff]  ;;  %v83_v12 = vld [vmem:[%s399_s3 + $0x30] sm:$0xff]  ;;  %v82_v13 = vld [vmem:[%s399_s3 + $0x28] sm:$0xff] }
   0xa   :  { %v81_v14 = vld [vmem:[%s399_s3 + $0x20] sm:$0xff]  ;;  %v80_v15 = vld [vmem:[%s399_s3 + $0x18] sm:$0xff]  ;;  %v79_v16 = vld [vmem:[%s399_s3 + $0x10] sm:$0xff] }
   0xb   :  { %99 = vmatpush.msra.mxu1 %v90_v5  ;;  %v78_v17 = vld [vmem:[%s399_s3 + $0x8] sm:$0xff]  ;;  %v77_v18 = vld [vmem:[%s399_s3] sm:$0xff]  ;;  %v133_v19 = vld [vmem:[%s401_s5 + $0x78] sm:$0xff] }
   0xc   :  { %v132_v20 = vld [vmem:[%s401_s5 + $0x70] sm:$0xff]  ;;  %138 = vmatpush.msra.mxu2 %v133_v19  ;;  %v131_v21 = vld [vmem:[%s401_s5 + $0x68] sm:$0xff]  ;;  %v130_v22 = vld [vmem:[%s401_s5 + $0x60] sm:$0xff] }
   0xd   :  { %100 = vmatpush.msra.mxu1 %v89_v6  ;;  %v129_v23 = vld [vmem:[%s401_s5 + $0x58] sm:$0xff]  ;;  %v128_v24 = vld [vmem:[%s401_s5 + $0x50] sm:$0xff]  ;;  %v127_v25 = vld [vmem:[%s401_s5 + $0x48] sm:$0xff] }
   0xe   :  { %139 = vmatpush.msra.mxu2 %v132_v20  ;;  %v126_v26 = vld [vmem:[%s401_s5 + $0x40] sm:$0xff]  ;;  %v125_v27 = vld [vmem:[%s401_s5 + $0x38] sm:$0xff]  ;;  %v124_v28 = vld [vmem:[%s401_s5 + $0x30] sm:$0xff] }
   0xf   :  { %101 = vmatpush.msra.mxu1 %v88_v7  ;;  %v123_v29 = vld [vmem:[%s401_s5 + $0x28] sm:$0xff]  ;;  %v122_v30 = vld [vmem:[%s401_s5 + $0x20] sm:$0xff]  ;;  %v121_v31 = vld [vmem:[%s401_s5 + $0x18] sm:$0xff] }
  0x10   :  { %140 = vmatpush.msra.mxu2 %v131_v21  ;;  %v180_v32 = vld [vmem:[%s398_s2] ss:$0 sm:$0xff]  ;;  %v120_v36 = vld [vmem:[%s401_s5 + $0x10] sm:$0xff]  ;;  %v119_v37 = vld [vmem:[%s401_s5 + $0x8] sm:$0xff] }
  0x11   :  { %102 = vmatpush.msra.mxu1 %v87_v8  ;;  %v118_v38 = vld [vmem:[%s401_s5] sm:$0xff] }
  0x12   :  { %141 = vmatpush.msra.mxu2 %v130_v22  ;;  %v181_v39 = vld [vmem:[%s400_s4] ss:$0 sm:$0xff] }
  0x13   :  { %103 = vmatpush.msra.mxu1 %v86_v9  ;;  %v182_v43 = vld [vmem:[%s402_s6] ss:$0 sm:$0xff] }
  0x14   :  { %142 = vmatpush.msra.mxu2 %v129_v23 }
  0x15   :  { %104 = vmatpush.msra.mxu1 %v85_v10 }
  0x16   :  { %143 = vmatpush.msra.mxu2 %v128_v24 }
  0x17   :  { %105 = vmatpush.msra.mxu1 %v84_v11 }
  0x18   :  { %144 = vmatpush.msra.mxu2 %v127_v25 }
  0x19   :  { %106 = vmatpush.msra.mxu1 %v83_v12 }
  0x1a   :  { %145 = vmatpush.msra.mxu2 %v126_v26 }
  0x1b   :  { %107 = vmatpush.msra.mxu1 %v82_v13 }
  0x1c   :  { %146 = vmatpush.msra.mxu2 %v125_v27 }
  0x1d   :  { %108 = vmatpush.msra.mxu1 %v81_v14 }
  0x1e   :  { %147 = vmatpush.msra.mxu2 %v124_v28 }
  0x1f   :  { %109 = vmatpush.msra.mxu1 %v80_v15 }
  0x20   :  { %148 = vmatpush.msra.mxu2 %v123_v29 }
  0x21   :  { %110 = vmatpush.msra.mxu1 %v79_v16 }
  0x22   :  { %149 = vmatpush.msra.mxu2 %v122_v30 }
  0x23   :  { %111 = vmatpush.msra.mxu1 %v78_v17 }
  0x24   :  { %150 = vmatpush.msra.mxu2 %v121_v31 }
  0x25   :  { %112 = vmatpush.msra.mxu1 %v77_v18 }
  0x26   :  { %151 = vmatpush.msra.mxu2 %v120_v36 }
  0x28   :  { %152 = vmatpush.msra.mxu2 %v119_v37 }
  0x2a   :  { %153 = vmatpush.msra.mxu2 %v118_v38 }
  0x86   :  { %v73_v33 = vpop.f32.mrf.mxu0 }
  0x87   :  { %v74_v34 = vadd.f32 %v180_v32, %v73_v33 }
  0x89   :  { %v76_v35 = vmax.f32 %v74_v34, 0.0 }
  0x8b   :  { %113 = vmatmul.f32.vlgmr.msra.gmra.mxu1 %v76_v35 }
 0x108   :  { %v114_v40 = vpop.f32.mrf.mxu1 }
 0x109   :  { %v115_v41 = vadd.f32 %v181_v39, %v114_v40 }
 0x10b   :  { %v117_v42 = vmax.f32 %v115_v41, 0.0 }
 0x10d   :  { %154 = vmatmul.f32.vlgmr.msra.gmra.mxu2 %v117_v42 }
 0x190   :  { %v155_v44 = vpop.f32.mrf.mxu2 }
 0x191   :  { %v156_v45 = vadd.f32 %v182_v43, %v155_v44 }
 0x193   :  { %158 = vst.msk [vmem:[#allocation5] sm:$0xff] %vm48_vm1, %v156_v45 }
 0x194   :  { %169 = dma.vmem_to_hbm [thread:$0]  %s165_s26, 128, %s167_s29, [#allocation4]  }
 0x195   :  { %233 = dma.done.wait [#allocation4], 128  }
 0x196   :  { %234 = vsyncadd [#allocation4], 4294967168 }
 0x197   :  { %174 = vsyncpa [#allocation3], 1 }
 0x198   :  { %175 = vsyncpa [#allocation4], 1 }

</bundles_post_ra>
